<compile_context>
chip_gen: v7x
topology: tpu7x:2x2x1
jax: 0.10.0
libtpu: 0.0.40
codegen_flags: <defaults>
</compile_context>

<pallas_src>
import functools

import jax
import jax.numpy as jnp
from jax import lax
from jax.experimental import pallas as pl
from jax.experimental.pallas import tpu as pltpu


def _edge_mlp_kernel(src_ref, dst_ref, edge_ref, batch_ref, w_ref, out_ref,
                     x_scratch, *, activation: bool, num_graphs: int,
                     node_dim: int, edge_dim: int):
    fn, fe = node_dim, edge_dim
    feat = 2 * fn + fe
    tile_e = src_ref.shape[0]

    # Assemble the (virtual) concatenation [src | dest | edge | onehot(batch)]
    # into a VMEM scratch at static lane offsets.  One masked store per field
    # per vreg; everything stays inside a single 128-lane group for small dims.
    x_scratch[:, 0:fn] = src_ref[...]
    x_scratch[:, fn:2 * fn] = dst_ref[...]
    x_scratch[:, 2 * fn:feat] = edge_ref[...]

    # In-kernel gather of per-graph globals as a one-hot selector.  The rows of
    # the combined weight already contain uw = u @ W_u + b, so the single dot
    # below reproduces u[batch] @ W_u + b exactly (one-hot rows sum to 1).
    graph_ids = lax.broadcasted_iota(jnp.int32, (tile_e, num_graphs), 1)
    onehot = (batch_ref[...] == graph_ids).astype(x_scratch.dtype)
    x_scratch[:, feat:feat + num_graphs] = onehot

    # Single MXU matmul for the whole linear layer (bias included via uw).
    acc = jnp.dot(x_scratch[...], w_ref[...],
                  preferred_element_type=jnp.float32)
    if activation:
        acc = jnp.maximum(acc, 0.0)
    out_ref[...] = acc.astype(out_ref.dtype)


def _round_up(x, m):
    return ((x + m - 1) // m) * m


def edge_model_forward(src, dest, edge_attr, u, batch, w, b,
                       *, activation=True, tile_e=4096):
    """Pallas implementation of EdgeModel.forward.

    src, dest:  [E, Fn]  float32
    edge_attr:  [E, Fe]  float32
    u:          [B, Fu]  float32
    batch:      [E]      int32 (graph index per edge, must lie in [0, B))
    w:          [in_dim, out_dim]  where in_dim = 2*Fn + Fe + Fu
    b:          [out_dim]
    """
    E, Fn = src.shape
    Fe = edge_attr.shape[1]
    B, Fu = u.shape
    out_dim = w.shape[1]
    feat = 2 * Fn + Fe
    assert w.shape[0] == feat + Fu

    # Fold u @ W_u + b into a tiny [B, out_dim] table and stack it under the
    # feature weights -> one combined weight, one matmul per tile.
    uw = jnp.dot(u, w[feat:], precision=jax.lax.Precision.HIGHEST) + b[None, :]
    w_comb = jnp.concatenate([w[:feat], uw], axis=0)          # (feat + B, out)
    batch2 = batch.reshape(E, 1).astype(jnp.int32)

    # Tile sizing: big tiles amortize the ~0.35 us per-step overhead, but keep
    # at least 2 grid steps (v7x has 2 TensorCores sharing the parallel axis)
    # and keep everything a multiple of 8 (f32 sublane tiling).
    tile_e = _round_up(max(8, tile_e), 8)
    if E > 8:
        tile_e = min(tile_e, _round_up(-(-E // 2), 8))
    else:
        tile_e = min(tile_e, _round_up(E, 8))
    grid = (pl.cdiv(E, tile_e),)

    # Each narrow f32 block lane-pads to 128 in VMEM; budget the scoped VMEM
    # limit from that (5 double-buffered streams + 1 scratch), capped at the
    # v7x physical 64 MiB per TensorCore.
    blk_bytes = tile_e * 128 * 4
    vmem_limit = int(min(64 * 1024 * 1024,
                         max(32 * 1024 * 1024, 2 * blk_bytes * (2 * 5 + 1))))

    edge_spec = lambda f: pl.BlockSpec((tile_e, f), lambda i: (i, 0))

    out = pl.pallas_call(
        functools.partial(_edge_mlp_kernel,
                          activation=activation, num_graphs=B,
                          node_dim=Fn, edge_dim=Fe),
        out_shape=jax.ShapeDtypeStruct((E, out_dim), src.dtype),
        grid_spec=pltpu.PrefetchScalarGridSpec(
            num_scalar_prefetch=0,
            grid=grid,
            in_specs=[
                edge_spec(Fn),                                     # src tile
                edge_spec(Fn),                                     # dest tile
                edge_spec(Fe),                                     # edge tile
                edge_spec(1),                                      # graph idx
                pl.BlockSpec((feat + B, out_dim), lambda i: (0, 0)),  # weights
            ],
            out_specs=pl.BlockSpec((tile_e, out_dim), lambda i: (i, 0)),
            scratch_shapes=[pltpu.VMEM((tile_e, feat + B), jnp.float32)],
        ),
        compiler_params=pltpu.CompilerParams(
            dimension_semantics=("parallel",),
            vmem_limit_bytes=vmem_limit),
    )(src, dest, edge_attr, batch2, w_comb)

    return out


def _reference(src, dest, edge_attr, u, batch, w, b, activation=True):
    x = jnp.concatenate([src, dest, edge_attr, u[batch]], axis=-1)
    y = jnp.dot(x, w, precision=jax.lax.Precision.HIGHEST) + b
    return jnp.maximum(y, 0.0) if activation else y


if __name__ == "__main__":
    key = jax.random.PRNGKey(0)
    k_src, k_dst, k_edge, k_u, k_batch, k_w, k_b = jax.random.split(key, 7)

    E, Fn, Fe, Fu, B, out_dim = 64, 16, 8, 8, 2, 32
    in_dim = 2 * Fn + Fe + Fu  # 48

    src = jax.random.normal(k_src, (E, Fn), dtype=jnp.float32)
    dest = jax.random.normal(k_dst, (E, Fn), dtype=jnp.float32)
    edge_attr = jax.random.normal(k_edge, (E, Fe), dtype=jnp.float32)
    u = jax.random.normal(k_u, (B, Fu), dtype=jnp.float32)
    batch = jax.random.randint(k_batch, (E,), 0, B, dtype=jnp.int32)

    # Deterministic Linear init (mimics PyTorch's U(-1/sqrt(in), 1/sqrt(in))).
    bound = 1.0 / (in_dim ** 0.5)
    w = jax.random.uniform(k_w, (in_dim, out_dim), jnp.float32, -bound, bound)
    b = jax.random.uniform(k_b, (out_dim,), jnp.float32, -bound, bound)

    out = edge_model_forward(src, dest, edge_attr, u, batch, w, b,
                             activation=True)
    out = jax.block_until_ready(out)

    ref = _reference(src, dest, edge_attr, u, batch, w, b, activation=True)
    assert out.shape == (E, out_dim)
    assert jnp.allclose(out, ref, atol=3e-5, rtol=1e-5)

    print("KERNEL_OK")
</pallas_src>

<mosaic_0001>
module attributes {stable_mosaic.version = 11 : i64} {
  func.func @_edge_mlp_kernel(%arg0: i32, %arg1: memref<32x16xf32, #tpu.memory_space<vmem>>, %arg2: memref<32x16xf32, #tpu.memory_space<vmem>>, %arg3: memref<32x8xf32, #tpu.memory_space<vmem>>, %arg4: memref<32x1xi32, #tpu.memory_space<vmem>>, %arg5: memref<42x32xf32, #tpu.memory_space<vmem>>, %arg6: memref<32x32xf32, #tpu.memory_space<vmem>>, %arg7: memref<32x42xf32, #tpu.memory_space<vmem>>) attributes {dimension_semantics = [#tpu.dimension_semantics<parallel>], iteration_bounds = array<i64: 2>, scalar_prefetch = 0 : i64, scratch_operands = 1 : i64, tpu.core_type = #tpu.core_type<tc>, window_params = [{transform_indices = @transform_0, window_bounds = array<i64: 32, 16>}, {transform_indices = @transform_1, window_bounds = array<i64: 32, 16>}, {transform_indices = @transform_2, window_bounds = array<i64: 32, 8>}, {transform_indices = @transform_3, window_bounds = array<i64: 32, 1>}, {pipeline_mode = #tpu.pipeline_mode<synchronous>, transform_indices = @transform_4, window_bounds = array<i64: 42, 32>}, {transform_indices = @transform_5, window_bounds = array<i64: 32, 32>}]} {
    %c0 = arith.constant 0 : index
    %c0_0 = arith.constant 0 : index
    %0 = vector.load %arg1[%c0, %c0_0] : memref<32x16xf32, #tpu.memory_space<vmem>>, vector<32x16xf32>
    %c0_1 = arith.constant 0 : index
    %c0_2 = arith.constant 0 : index
    %1 = vector.load %arg7[%c0_1, %c0_2] : memref<32x42xf32, #tpu.memory_space<vmem>>, vector<32x16xf32>
    tpu.vector_store %arg7[%c0_1, %c0_2], %0 {strides = array<i32>} : memref<32x42xf32, #tpu.memory_space<vmem>>, vector<32x16xf32>,
    %c0_3 = arith.constant 0 : index
    %c0_4 = arith.constant 0 : index
    %2 = vector.load %arg2[%c0_3, %c0_4] : memref<32x16xf32, #tpu.memory_space<vmem>>, vector<32x16xf32>
    %c0_5 = arith.constant 0 : index
    %c16 = arith.constant 16 : index
    %3 = vector.load %arg7[%c0_5, %c16] : memref<32x42xf32, #tpu.memory_space<vmem>>, vector<32x16xf32>
    tpu.vector_store %arg7[%c0_5, %c16], %2 {strides = array<i32>} : memref<32x42xf32, #tpu.memory_space<vmem>>, vector<32x16xf32>,
    %c0_6 = arith.constant 0 : index
    %c0_7 = arith.constant 0 : index
    %4 = vector.load %arg3[%c0_6, %c0_7] : memref<32x8xf32, #tpu.memory_space<vmem>>, vector<32x8xf32>
    %c0_8 = arith.constant 0 : index
    %c32 = arith.constant 32 : index
    %5 = vector.load %arg7[%c0_8, %c32] : memref<32x42xf32, #tpu.memory_space<vmem>>, vector<32x8xf32>
    tpu.vector_store %arg7[%c0_8, %c32], %4 {strides = array<i32>} : memref<32x42xf32, #tpu.memory_space<vmem>>, vector<32x8xf32>,
    %6 = tpu.iota {dimensions = array<i32: 1>} : vector<32x2xi32>
    %c0_9 = arith.constant 0 : index
    %c0_10 = arith.constant 0 : index
    %7 = vector.load %arg4[%c0_9, %c0_10] : memref<32x1xi32, #tpu.memory_space<vmem>>, vector<32x1xi32>
    %8 = vector.broadcast %7 : vector<32x1xi32> to vector<32x2xi32>
    %9 = arith.cmpi eq, %8, %6 : vector<32x2xi32>
    %10 = arith.extui %9 : vector<32x2xi1> to vector<32x2xi32>
    %11 = arith.sitofp %10 : vector<32x2xi32> to vector<32x2xf32>
    %c0_11 = arith.constant 0 : index
    %c40 = arith.constant 40 : index
    %12 = vector.load %arg7[%c0_11, %c40] : memref<32x42xf32, #tpu.memory_space<vmem>>, vector<32x2xf32>
    tpu.vector_store %arg7[%c0_11, %c40], %11 {strides = array<i32>} : memref<32x42xf32, #tpu.memory_space<vmem>>, vector<32x2xf32>,
    %c0_12 = arith.constant 0 : index
    %c0_13 = arith.constant 0 : index
    %13 = vector.load %arg7[%c0_12, %c0_13] : memref<32x42xf32, #tpu.memory_space<vmem>>, vector<32x42xf32>
    %c0_14 = arith.constant 0 : index
    %c0_15 = arith.constant 0 : index
    %14 = vector.load %arg5[%c0_14, %c0_15] : memref<42x32xf32, #tpu.memory_space<vmem>>, vector<42x32xf32>
    %cst = arith.constant dense<0.000000e+00> : vector<32x32xf32>
    %15 = tpu.matmul %13, %14, %cst {dimension_numbers = #tpu.dot_dimension_numbers<[1], [0], [0], [1], [0, 0, 1, 1], [], []>} : vector<32x42xf32>, vector<42x32xf32>, vector<32x32xf32> -> vector<32x32xf32>
    %cst_16 = arith.constant 0.000000e+00 : f32
    %16 = vector.broadcast %cst_16 : f32 to vector<32x32xf32>
    %17 = arith.maximumf %15, %16 : vector<32x32xf32>
    %c0_17 = arith.constant 0 : index
    %c0_18 = arith.constant 0 : index
    %18 = vector.load %arg6[%c0_17, %c0_18] : memref<32x32xf32, #tpu.memory_space<vmem>>, vector<32x32xf32>
    tpu.vector_store %arg6[%c0_17, %c0_18], %17 {strides = array<i32>} : memref<32x32xf32, #tpu.memory_space<vmem>>, vector<32x32xf32>,
    return
  }
  func.func @transform_0(%arg0: i32) -> (i32, i32) {
    %c0_i32 = arith.constant 0 : i32
    %c0_i32_0 = arith.constant 0 : i32
    return %arg0, %c0_i32 : i32, i32
  }
  func.func @transform_1(%arg0: i32) -> (i32, i32) {
    %c0_i32 = arith.constant 0 : i32
    %c0_i32_0 = arith.constant 0 : i32
    return %arg0, %c0_i32 : i32, i32
  }
  func.func @transform_2(%arg0: i32) -> (i32, i32) {
    %c0_i32 = arith.constant 0 : i32
    %c0_i32_0 = arith.constant 0 : i32
    return %arg0, %c0_i32 : i32, i32
  }
  func.func @transform_3(%arg0: i32) -> (i32, i32) {
    %c0_i32 = arith.constant 0 : i32
    %c0_i32_0 = arith.constant 0 : i32
    return %arg0, %c0_i32 : i32, i32
  }
  func.func @transform_4(%arg0: i32) -> (i32, i32) {
    %c0_i32 = arith.constant 0 : i32
    %c0_i32_0 = arith.constant 0 : i32
    %c0_i32_1 = arith.constant 0 : i32
    return %c0_i32, %c0_i32_0 : i32, i32
  }
  func.func @transform_5(%arg0: i32) -> (i32, i32) {
    %c0_i32 = arith.constant 0 : i32
    %c0_i32_0 = arith.constant 0 : i32
    return %arg0, %c0_i32 : i32, i32
  }
}

</mosaic_0001>

<bundles_post_ra>
// kernel: tpu_custom_call.1
= control target key start
LH: loop header
LB: loop body
LE: loop exit
PB: predicated region body
PF: predicated region fallthrough
CT: control target
= control target key end

     0   :  { %s761_s18 = smov 0   ;;  %s820_s0 = inlined_call_operand.vmem [shape: f32[64,16], index: 0, kind: input, shape index: {}]   ;;  %s821_s1 = inlined_call_operand.vmem [shape: f32[64,16], index: 1, kind: input, shape index: {}]   ;;  %s822_s2 = inlined_call_operand.vmem [shape: f32[64,8], index: 2, kind: input, shape index: {}]   ;;  %s823_s3 = inlined_call_operand.vmem [shape: s32[64,1], index: 3, kind: input, shape index: {}]   ;;  %s824_s4 = inlined_call_operand.vmem [shape: f32[42,32], index: 4, kind: input, shape index: {}]   ;;  %s825_s5 = inlined_call_operand.vmem [shape: f32[64,32], index: 5, kind: output, shape index: {}]  }
   0x1 LB: > { %s617_s19 = sadd.s32 4294967295, %s723_s18   ;;  %p621_p0 = scmp.ge.s32.totalorder %s723_s18, 1  ;;  %s723_s18 = sphi %s761_s18, %s15_s18  }
   0x2   : > { %p221_p1 = scmp.lt.s32.totalorder %s723_s18, 3 }
   0x4   : > { %p222_p2 = pnand %p621_p0, %p221_p1 }
   0x5   : > { %s622_s20 = sshll.u32 (!%p222_p2), %s617_s19, 2  ;;  %v725_v0 = vmov (!%p222_p2), 0   ;;  %s726_s6 = smov (!%p222_p2), 16   ;;  %vm298_vm0 = vcmask (!%p222_p2), 130048   ;;  %v408_v14 = vld [vmem:[%s824_s4] sm:$0xff] (!%p222_p2)  ;;  %v409_v15 = vld [vmem:[%s824_s4 + $0x8] sm:$0xff] (!%p222_p2)  ;;  %v353_v19 = vlaneseq (!%p222_p2) }
   0x6   : > { %225 = sbr.rel (%p222_p2) target bundleno = 499 (0x1f3), region = 40  ;;  %706 = vset.pattern.permute.xlu1 (!%p222_p2), %v725_v0  ;;  %705 = vset.pattern.permute.xlu0 (!%p222_p2), %v725_v0  ;;  %p265_p3 = scmp.lt.s32.totalorder (!%p222_p2), %s622_s20, 7  ;;  %v671_v17 = vpack.c.bf16 (!%p222_p2), %v409_v15, %v408_v14  ;;  %v410_v21 = vld [vmem:[%s824_s4 + $0x10] sm:$0xff] (!%p222_p2)  ;;  %v411_v22 = vld [vmem:[%s824_s4 + $0x18] sm:$0xff] (!%p222_p2)  ;;  %v412_v27 = vld [vmem:[%s824_s4 + $0x20] sm:$0xff] (!%p222_p2)  ;;  %vm427_vm1 = vcmask (!%p222_p2), 1041408  }
   0x7   : > { %s727_s7 = smov (!%p222_p2), 32   ;;  %v675_v23 = vpack.c.bf16 (!%p222_p2), %v411_v22, %v410_v21  ;;  %v354_v24 = vand.u32 (!%p222_p2), 127, %v353_v19  ;;  %v413_v28 = vld [vmem:[%s824_s4 + $0x28] sm:$0x3] (!%p222_p2)  ;;  %vm728_vm3 = vmmov (!%p222_p2), 1   ;;  %v729_v32 = vmov (!%p222_p2), 0.0  }
   0x8   : > { %672 = vmatprep.subr.bf16.mxu0 (!%p222_p2), %v671_v17  ;;  %685 = vmatprep.subr.bf16.mxu1 (!%p222_p2), %v671_v17  ;;  %v679_v29 = vpack.c.bf16 (!%p222_p2), %v413_v28, %v412_v27  ;;  %vm680_vm4 = vmpackc.low (!%p222_p2), %vm427_vm1, %vm728_vm3  ;;  %vm323_vm8 = vcmask (!%p222_p2), 261248   ;;  %s730_s25 = smov (!%p222_p2), 40   ;;  %vm348_vm9 = vcmask (!%p222_p2), 326912   ;;  %vm399_vm10 = vcmask (!%p222_p2), 343360  }
   0x9   : > { %674 = vmatpush3.bf16.msra.mxu0 (!%p222_p2), %v671_v17  ;;  %688 = vmatpush3.bf16.msra.mxu1 (!%p222_p2), %v671_v17  ;;  %vm414_vm11 = vcmask (!%p222_p2), 343040   ;;  %vm520_vm12 = vcmask (!%p222_p2), 261120  }
   0xa   : > { %676 = vmatprep.subr.bf16.mxu0 (!%p222_p2), %v675_v23  ;;  %686 = vmatprep.subr.bf16.mxu1 (!%p222_p2), %v675_v23 }
   0xd   : > { %s827_s20 = smov (!%p265_p3, %s622_s20), 7  ;;  %678 = vmatpush3.bf16.msra.mxu0 %v675_v23  ;;  %689 = vmatpush3.bf16.msra.mxu1 %v675_v23 }
   0xe   : > { %s769_s21 = sshll.u32 %s827_s20, 3  ;;  %681 = vmatprep.subr.msk.bf16.mxu0 %vm680_vm4, %v679_v29  ;;  %687 = vmatprep.subr.msk.bf16.mxu1 %vm680_vm4, %v679_v29 }
   0xf   : > { %s286_s24 = scalar_lea.vmem %s823_s3, %s769_s21  ;;  %s274_s27 = scalar_lea.vmem %s821_s1, %s769_s21 }
  0x10   : > { %v357_v1 = vld [vmem:[%s286_s24 + $0x10] sm:$0xff]  ;;  %v355_v2 = vld [vmem:[%s286_s24] sm:$0xff]  ;;  %v358_v3 = vld [vmem:[%s286_s24 + $0x18] sm:$0xff]  ;;  %s280_s30 = scalar_lea.vmem %s822_s2, %s769_s21  ;;  %s268_s10 = scalar_lea.vmem %s820_s0, %s769_s21 }
  0x11   : > { %366 = vperm.xlu1 %706, %v357_v1   ;;  %360 = vperm.xlu0 %705, %v355_v2   ;;  %v356_v4 = vld [vmem:[%s286_s24 + $0x8] sm:$0xff]  ;;  %v303_v6 = vld [vmem:[%s274_s27] sm:$0xff]  ;;  %v305_v7 = vld [vmem:[%s274_s27 + $0x10] sm:$0xff]  ;;  %s292_s28 = scalar_lea.vmem %s825_s5, %s769_s21 }
  0x12   : > { %v304_v5 = vld [vmem:[%s274_s27 + $0x8] sm:$0xff]  ;;  %v328_v8 = vld [vmem:[%s280_s30] sm:$0xff]  ;;  %v330_v9 = vld [vmem:[%s280_s30 + $0x10] sm:$0xff]  ;;  %684 = vmatpush3.bf16.msk.msra.mxu0 %vm680_vm4, %v679_v29  ;;  %690 = vmatpush3.bf16.msk.msra.mxu1 %vm680_vm4, %v679_v29 }
  0x13   : > { %v329_v10 = vld [vmem:[%s280_s30 + $0x8] sm:$0xff]  ;;  %v294_v12 = vld [vmem:[%s268_s10] sm:$0xff]  ;;  %v296_v13 = vld [vmem:[%s268_s10 + $0x10] sm:$0xff] }
  0x14   : > { %v295_v11 = vld [vmem:[%s268_s10 + $0x8] sm:$0xff]  ;;  %299 = vst.msk [vmem:[#allocation2] sm:$0xff] %vm298_vm0, %v294_v12  ;;  %301 = vst.msk [vmem:[#allocation2 + $0x10] sm:$0xff] %vm298_vm0, %v296_v13  ;;  %v306_v16 = vld [vmem:[%s274_s27 + $0x18] sm:$0xff] }
  0x15   : > { %369 = vperm.xlu1 %706, %v358_v3   ;;  %363 = vperm.xlu0 %705, %v356_v4   ;;  %300 = vst.msk [vmem:[#allocation2 + $0x8] sm:$0xff] %vm298_vm0, %v295_v11  ;;  %v331_v18 = vld [vmem:[%s280_s30 + $0x18] sm:$0xff] }
  0x16   : > { %v297_v20 = vld [vmem:[%s268_s10 + $0x18] sm:$0xff] }
  0x17   : > { %302 = vst.msk [vmem:[#allocation2 + $0x18] sm:$0xff] %vm298_vm0, %v297_v20 }
  0x19   : > { %313 = vrot.lane.b32.xlu1 %v304_v5, %s726_s6  ;;  %311 = vrot.lane.b32.xlu0 %v303_v6, %s726_s6 }
  0x1d   : > { %315 = vrot.lane.b32.xlu1 %v305_v7, %s726_s6  ;;  %336 = vrot.lane.b32.xlu0 %v328_v8, %s727_s7 }
  0x21   : > { %340 = vrot.lane.b32.xlu1 %v330_v9, %s727_s7  ;;  %338 = vrot.lane.b32.xlu0 %v329_v10, %s727_s7 }
  0x25   : > { %317 = vrot.lane.b32.xlu0 %v306_v16, %s726_s6 }
  0x29   : > { %342 = vrot.lane.b32.xlu0 %v331_v18, %s727_s7 }
  0x90   : > { %v367_v25 = vpop.permute.xlu1 %366  ;;  %v361_v26 = vpop.permute.xlu0 %360 }
  0x91   : > { %vm371_vm2 = vcmp.eq.s32.totalorder %v361_v26, %v354_v24  ;;  %vm373_vm5 = vcmp.eq.s32.totalorder %v367_v25, %v354_v24 }
  0x92   : > { %v632_v33 = vsel %vm371_vm2, 1.0, %v729_v32  ;;  %v634_v36 = vsel %vm373_vm5, 1.0, %v729_v32 }
  0x94   : > { %v370_v30 = vpop.permute.xlu1 %369  ;;  %v364_v31 = vpop.permute.xlu0 %363 }
  0x95   : > { %vm374_vm6 = vcmp.eq.s32.totalorder %v370_v30, %v354_v24  ;;  %vm372_vm7 = vcmp.eq.s32.totalorder %v364_v31, %v354_v24 }
  0x96   : > { %v633_v34 = vsel %vm372_vm7, 1.0, %v729_v32  ;;  %v635_v37 = vsel %vm374_vm6, 1.0, %v729_v32 }
  0x97   : > { %v707_v35 = vpack.i.bf16 %v633_v34, %v632_v33  ;;  %v712_v40 = vpack.i.bf16 %v635_v37, %v634_v36 }
  0x98   : > { %v314_v38 = vpop.permute.xlu1 %313  ;;  %v312_v39 = vpop.permute.xlu0 %311 }
  0x99   : > { %708 = vrot.lane.b32.xlu1 %v707_v35, %s730_s25  ;;  %325 = vst.msk [vmem:[#allocation2 + $0x8] sm:$0xff] %vm323_vm8, %v314_v38  ;;  %324 = vst.msk [vmem:[#allocation2] sm:$0xff] %vm323_vm8, %v312_v39 }
  0x9c   : > { %v316_v41 = vpop.permute.xlu1 %315  ;;  %v337_v42 = vpop.permute.xlu0 %336 }
  0x9d   : > { %713 = vrot.lane.b32.xlu1 %v712_v40, %s730_s25  ;;  %326 = vst.msk [vmem:[#allocation2 + $0x10] sm:$0xff] %vm323_vm8, %v316_v41 }
  0x9e   : > { %349 = vst.msk [vmem:[#allocation2] sm:$0xff] %vm348_vm9, %v337_v42 }
  0xa0   : > { %v341_v43 = vpop.permute.xlu1 %340  ;;  %v339_v44 = vpop.permute.xlu0 %338 }
  0xa1   : > { %351 = vst.msk [vmem:[#allocation2 + $0x10] sm:$0xff] %vm348_vm9, %v341_v43  ;;  %350 = vst.msk [vmem:[#allocation2 + $0x8] sm:$0xff] %vm348_vm9, %v339_v44 }
  0xa4   : > { %v318_v45 = vpop.permute.xlu0 %317 }
  0xa5   : > { %327 = vst.msk [vmem:[#allocation2 + $0x18] sm:$0xff] %vm323_vm8, %v318_v45 }
  0xa8   : > { %v343_v46 = vpop.permute.xlu0 %342 }
  0xa9   : > { %352 = vst.msk [vmem:[#allocation2 + $0x18] sm:$0xff] %vm348_vm9, %v343_v46 }
 0x10b   : > { %v709_v47 = vpop.permute.xlu1 %708 }
 0x10c   : > { %v711_v48 = vunpack.i.h.bf16 %v709_v47  ;;  %v710_v49 = vunpack.i.l.bf16 %v709_v47 }
 0x10e   : > { %400 = vst.msk [vmem:[#allocation2] sm:$0xff] %vm399_vm10, %v710_v49  ;;  %401 = vst.msk [vmem:[#allocation2 + $0x8] sm:$0xff] %vm399_vm10, %v711_v48 }
 0x10f   : > { %v714_v50 = vpop.permute.xlu1 %713 }
 0x110   : > { %v716_v51 = vunpack.i.h.bf16 %v714_v50  ;;  %v715_v52 = vunpack.i.l.bf16 %v714_v50 }
 0x112   : > { %402 = vst.msk [vmem:[#allocation2 + $0x10] sm:$0xff] %vm399_vm10, %v715_v52  ;;  %403 = vst.msk [vmem:[#allocation2 + $0x18] sm:$0xff] %vm399_vm10, %v716_v51 }
 0x115   : > { %v404_v53 = vld [vmem:[#allocation2] sm:$0xff]  ;;  %v405_v54 = vld [vmem:[#allocation2 + $0x8] sm:$0xff] }
 0x116   : > { %665 = vmatprep.mubr.msk.f32.mxu0 %vm414_vm11, %v404_v53 }
 0x117   : > { %666 = vmatmul.mubr.msk.f32.vlgmr.msra.gmra.mrb[0].mxu0 %vm414_vm11, %v405_v54 }
 0x119   : > { %v406_v55 = vld [vmem:[#allocation2 + $0x10] sm:$0xff]  ;;  %v407_v56 = vld [vmem:[#allocation2 + $0x18] sm:$0xff] }
 0x11a   : > { %668 = vmatprep.mubr.msk.f32.mxu1 %vm414_vm11, %v406_v55 }
 0x11b   : > { %669 = vmatmul.mubr.msk.f32.vlgmr.msra.gmra.mrb[0].mxu1 %vm414_vm11, %v407_v56 }
 0x1ea   : > { %v667_v57 = vpop.f32.mrb[0].mxu0 }
 0x1eb   : > { %v497_v58 = vpop.f32.mrb[1].mxu0  ;;  %v517_v60 = vmax.f32 %v667_v57, 0.0 }
 0x1ec   : > { %v516_v59 = vmax.f32 %v497_v58, 0.0 }
 0x1ed   : > { %522 = vst.msk [vmem:[%s292_s28 + $0x8] sm:$0xff] %vm520_vm12, %v517_v60 }
 0x1ee   : > { %521 = vst.msk [vmem:[%s292_s28] sm:$0xff] %vm520_vm12, %v516_v59  ;;  %v670_v61 = vpop.f32.mrb[0].mxu1 }
 0x1ef   : > { %v507_v62 = vpop.f32.mrb[1].mxu1  ;;  %v519_v0 = vmax.f32 %v670_v61, 0.0 }
 0x1f0   : > { %v518_v63 = vmax.f32 %v507_v62, 0.0 }
 0x1f1   : > { %524 = vst.msk [vmem:[%s292_s28 + $0x18] sm:$0xff] %vm520_vm12, %v519_v0 }
 0x1f2   : > { %523 = vst.msk [vmem:[%s292_s28 + $0x10] sm:$0xff] %vm520_vm12, %v518_v63 }
 0x1f3 PF: > { %s15_s18 = sadd.s32 1, %s723_s18  }
 0x1f4   : > { %p12_p4 = scmp.ge.s32.totalorder %s15_s18, 4  }
 0x1f6   :  { %14 = sbr.rel (!%p12_p4) target bundleno = 1 (0x1), region = 79 }

</bundles_post_ra>
